<compile_context>
chip_gen: v6e
topology: v6e:2x2x1
jax: 0.10.0
libtpu: 0.0.40
codegen_flags: <defaults>
</compile_context>

<pallas_src>
import math
import functools

import jax
import jax.numpy as jnp
from jax.experimental import pallas as pl
from jax.experimental.pallas import tpu as pltpu


def _round_up(x, m):
    return ((x + m - 1) // m) * m


def _arcloss_kernel(feat_ref, w_ref, out_ref, *, m, s, d, c_valid, c_pad):
    x = feat_ref[...]                       # (TM, D)   float32
    w = w_ref[...]                          # (D, Cp)   float32, col-normalized, /10 folded in

    # F.normalize(feature, dim=1): row-wise L2, eps clamp via rsqrt.
    sumsq = jnp.sum(x * x, axis=1, keepdims=True)
    xn = x * jax.lax.rsqrt(jnp.maximum(sumsq, 1e-24))

    # cos = (xn @ w_normalized) / 10 ; the 1/10 is already folded into `w`.
    if d <= 4:
        # Tiny K (module default D=2): MXU K-padding to 128 buys nothing;
        # an unrolled VPU broadcast-FMA is cheaper.
        cos = xn[:, 0:1] * w[0:1, :]
        for k in range(1, d):
            cos = cos + xn[:, k:k + 1] * w[k:k + 1, :]
    else:
        # MXU path: bf16 operands (~3x throughput), f32 accumulation.
        cos = jnp.dot(xn.astype(jnp.bfloat16), w.astype(jnp.bfloat16),
                      preferred_element_type=jnp.float32)

    # a = acos(cos); cos(a) == cos; cos(a + m) via the angle-addition identity.
    sc = s * cos                                             # s * cos(a)
    sin_a = jnp.sqrt(jnp.maximum(1.0 - cos * cos, 0.0))
    logit_m = sc * math.cos(m) - sin_a * (s * math.sin(m))   # == log(top)

    e = jnp.exp(sc)                                          # exp(s * cos(a))
    # Padded columns of W are exactly zero -> cos == 0 -> e == exp(0) == 1,
    # so the valid-column row sum is the full-row sum minus the pad count.
    e_sum = jnp.sum(e, axis=1, keepdims=True) - float(c_pad - c_valid)
    denom = jnp.exp(logit_m) + (e_sum - e)                   # top + down2
    # Padded lanes may go non-positive; keep them finite (sliced off by the
    # wrapper). Valid lanes are always >= exp(-s) and never hit this floor.
    denom = jnp.maximum(denom, 1e-30)

    # log(top / (top + down2)) == log(top) - log(top + down2)
    out_ref[...] = logit_m - jnp.log(denom)


def arc_loss_forward(feature, W, m=1.0, s=10.0, tile_m=None):
    """Pallas implementation of ArcLoss.forward(feature, m, s)."""
    N, D = feature.shape
    D2, C = W.shape
    assert D == D2, "feature_dim mismatch"

    # ---- one-time (per call) prep in the wrapper -------------------------
    # F.normalize(W, dim=0) hoisted out of the kernel; fold the /10 into it.
    w32 = W.astype(jnp.float32)
    w_norm = jnp.maximum(jnp.sqrt(jnp.sum(w32 * w32, axis=0, keepdims=True)), 1e-12)
    wn = (w32 / w_norm) * 0.1                                # (D, C)

    # Lane-dense class dimension: pad C up to a multiple of 128 with zeros.
    c_pad = _round_up(C, 128)
    if c_pad != C:
        wn = jnp.pad(wn, ((0, 0), (0, c_pad - C)))           # zero cols -> cos = 0 there

    # ---- per-generation VMEM / tile policy --------------------------------
    try:
        vmem_cap = int(pltpu.get_tpu_info().vmem_capacity_bytes)
    except Exception:
        vmem_cap = 64 * 1024 * 1024                          # conservative (v7x per-TC)
    big_vmem = vmem_cap >= 100 * 1024 * 1024                 # v5e / v6e: 128 MiB
    if big_vmem:
        budget = 56 * 1024 * 1024
        vmem_limit = 96 * 1024 * 1024
        tile_start = 1024
    else:                                                    # v7x: 64 MiB per TC
        budget = 28 * 1024 * 1024
        vmem_limit = 48 * 1024 * 1024
        tile_start = 512

    if tile_m is None:
        tile_m = tile_start

        def _vmem_est(tm):
            # feature + output double-buffered, W single-buffered (Buffered(1)),
            # ~5 live (tm, c_pad) f32 temporaries inside the body.
            return 4 * (2 * tm * D + 2 * tm * c_pad + D * c_pad + 5 * tm * c_pad)

        while tile_m > 8 and _vmem_est(tile_m) > budget:
            tile_m //= 2

    n_rows = _round_up(N, 8)
    tile_m = max(8, min(_round_up(tile_m, 8), n_rows))
    # v7x megacore only helps if the batch grid has >= 2 steps.
    if (not big_vmem) and (n_rows // tile_m) < 2 and n_rows >= 16:
        tile_m = max(8, _round_up(n_rows // 2, 8))

    n_pad = _round_up(N, tile_m)
    feat_p = feature.astype(jnp.float32)
    if n_pad != N:
        feat_p = jnp.pad(feat_p, ((0, n_pad - N), (0, 0)))

    grid = (n_pad // tile_m,)

    kernel = functools.partial(
        _arcloss_kernel, m=float(m), s=float(s), d=D, c_valid=C, c_pad=c_pad
    )

    cost = pl.CostEstimate(
        flops=2 * n_pad * D * c_pad + 12 * n_pad * c_pad,
        transcendentals=4 * n_pad * c_pad,                   # 2x exp, 1x log, 1x sqrt
        bytes_accessed=4 * (n_pad * D + D * c_pad + n_pad * c_pad),
    )

    # TODO(synk): add class-dimension (C) tiling with an e_sum accumulator for
    # very large class counts so VMEM use becomes independent of C.

    def _call(w_spec):
        return pl.pallas_call(
            kernel,
            out_shape=jax.ShapeDtypeStruct((n_pad, c_pad), jnp.float32),
            grid=grid,
            in_specs=[
                pl.BlockSpec((tile_m, D), lambda i: (i, 0)),  # feature tile
                w_spec,                                        # normalized W, resident
            ],
            out_specs=pl.BlockSpec((tile_m, c_pad), lambda i: (i, 0)),
            compiler_params=pltpu.CompilerParams(
                dimension_semantics=("parallel",),             # 2x on v7x megacore
                vmem_limit_bytes=vmem_limit,
            ),
            cost_estimate=cost,
        )(feat_p, wn)

    try:
        # Resident, constant-index block: a single buffer is enough.
        out_padded = _call(
            pl.BlockSpec((D, c_pad), lambda i: (0, 0), pipeline_mode=pl.Buffered(1))
        )
    except Exception:
        # Fallback for JAX builds that reject buffer_count=1.
        out_padded = _call(pl.BlockSpec((D, c_pad), lambda i: (0, 0)))

    return out_padded[:N, :C]


def _reference(feature, W, m=1.0, s=10.0):
    """Pure-JAX replica of the PyTorch forward (for verification)."""
    x = feature / jnp.maximum(jnp.linalg.norm(feature, axis=1, keepdims=True), 1e-12)
    w = W / jnp.maximum(jnp.linalg.norm(W, axis=0, keepdims=True), 1e-12)
    cos = jnp.matmul(x, w) / 10.0
    a = jnp.arccos(cos)
    top = jnp.exp(s * jnp.cos(a + m))
    e = jnp.exp(s * jnp.cos(a))
    down2 = jnp.sum(e, axis=1, keepdims=True) - e
    return jnp.log(top / (top + down2))


if __name__ == "__main__":
    # Module defaults: feature_dim=2, cls_dim=14.  Small synthetic batch.
    batch, feature_dim, cls_dim = 8, 2, 14

    key = jax.random.PRNGKey(0)
    k_feat, k_w = jax.random.split(key)

    feature = jax.random.normal(k_feat, (batch, feature_dim), dtype=jnp.float32)
    # Deterministic stand-in for nn.Parameter(torch.randn(feature_dim, cls_dim)).
    W = jax.random.normal(k_w, (feature_dim, cls_dim), dtype=jnp.float32)

    out = arc_loss_forward(feature, W, m=1.0, s=10.0)
    jax.block_until_ready(out)

    assert out.shape == (batch, cls_dim)
    assert bool(jnp.all(jnp.isfinite(out)))

    ref = _reference(feature, W, m=1.0, s=10.0)
    assert bool(jnp.allclose(out, ref, atol=2e-3, rtol=2e-3)), "mismatch vs reference"

    print("KERNEL_OK")
</pallas_src>

<mosaic_0001>
module attributes {stable_mosaic.version = 11 : i64} {
  func.func @_arcloss_kernel(%arg0: i32, %arg1: memref<8x2xf32, #tpu.memory_space<vmem>>, %arg2: memref<2x128xf32, #tpu.memory_space<vmem>>, %arg3: memref<8x128xf32, #tpu.memory_space<vmem>>) attributes {dimension_semantics = [#tpu.dimension_semantics<parallel>], iteration_bounds = array<i64: 1>, scalar_prefetch = 0 : i64, scratch_operands = 0 : i64, tpu.core_type = #tpu.core_type<tc>, window_params = [{transform_indices = @transform_0, window_bounds = array<i64: 8, 2>}, {pipeline_mode = #tpu.pipeline_mode<synchronous>, transform_indices = @transform_1, window_bounds = array<i64: 2, 128>}, {transform_indices = @transform_2, window_bounds = array<i64: 8, 128>}]} {
    %c0 = arith.constant 0 : index
    %c0_0 = arith.constant 0 : index
    %0 = vector.load %arg1[%c0, %c0_0] : memref<8x2xf32, #tpu.memory_space<vmem>>, vector<8x2xf32>
    %c0_1 = arith.constant 0 : index
    %c0_2 = arith.constant 0 : index
    %1 = vector.load %arg2[%c0_1, %c0_2] : memref<2x128xf32, #tpu.memory_space<vmem>>, vector<2x128xf32>
    %2 = arith.mulf %0, %0 : vector<8x2xf32>
    %cst = arith.constant dense<0.000000e+00> : vector<8xf32>
    %3 = vector.multi_reduction <add>, %2, %cst [1] : vector<8x2xf32> to vector<8xf32>
    %4 = vector.shape_cast %3 : vector<8xf32> to vector<8x1xf32>
    %cst_3 = arith.constant 1.000000e-24 : f32
    %5 = vector.broadcast %cst_3 : f32 to vector<8x1xf32>
    %6 = arith.maximumf %4, %5 : vector<8x1xf32>
    %7 = math.rsqrt %6 : vector<8x1xf32>
    %8 = vector.broadcast %7 : vector<8x1xf32> to vector<8x2xf32>
    %9 = arith.mulf %0, %8 : vector<8x2xf32>
    %10 = vector.extract_strided_slice %9 {offsets = [0, 0], sizes = [8, 1], strides = [1, 1]} : vector<8x2xf32> to vector<8x1xf32>
    %11 = vector.extract_strided_slice %1 {offsets = [0, 0], sizes = [1, 128], strides = [1, 1]} : vector<2x128xf32> to vector<1x128xf32>
    %12 = vector.broadcast %10 : vector<8x1xf32> to vector<8x128xf32>
    %13 = vector.broadcast %11 : vector<1x128xf32> to vector<8x128xf32>
    %14 = arith.mulf %12, %13 : vector<8x128xf32>
    %15 = vector.extract_strided_slice %9 {offsets = [0, 1], sizes = [8, 1], strides = [1, 1]} : vector<8x2xf32> to vector<8x1xf32>
    %16 = vector.extract_strided_slice %1 {offsets = [1, 0], sizes = [1, 128], strides = [1, 1]} : vector<2x128xf32> to vector<1x128xf32>
    %17 = vector.broadcast %15 : vector<8x1xf32> to vector<8x128xf32>
    %18 = vector.broadcast %16 : vector<1x128xf32> to vector<8x128xf32>
    %19 = arith.mulf %17, %18 : vector<8x128xf32>
    %20 = arith.addf %14, %19 : vector<8x128xf32>
    %cst_4 = arith.constant 1.000000e+01 : f32
    %21 = vector.broadcast %cst_4 : f32 to vector<8x128xf32>
    %22 = arith.mulf %21, %20 : vector<8x128xf32>
    %23 = arith.mulf %20, %20 : vector<8x128xf32>
    %cst_5 = arith.constant 1.000000e+00 : f32
    %24 = vector.broadcast %cst_5 : f32 to vector<8x128xf32>
    %25 = arith.subf %24, %23 : vector<8x128xf32>
    %cst_6 = arith.constant 0.000000e+00 : f32
    %26 = vector.broadcast %cst_6 : f32 to vector<8x128xf32>
    %27 = arith.maximumf %25, %26 : vector<8x128xf32>
    %28 = math.sqrt %27 : vector<8x128xf32>
    %cst_7 = arith.constant 0.540302277 : f32
    %29 = vector.broadcast %cst_7 : f32 to vector<8x128xf32>
    %30 = arith.mulf %22, %29 : vector<8x128xf32>
    %cst_8 = arith.constant 8.414710e+00 : f32
    %31 = vector.broadcast %cst_8 : f32 to vector<8x128xf32>
    %32 = arith.mulf %28, %31 : vector<8x128xf32>
    %33 = arith.subf %30, %32 : vector<8x128xf32>
    %34 = math.exp %22 : vector<8x128xf32>
    %cst_9 = arith.constant dense<0.000000e+00> : vector<8xf32>
    %35 = vector.multi_reduction <add>, %34, %cst_9 [1] : vector<8x128xf32> to vector<8xf32>
    %36 = vector.shape_cast %35 : vector<8xf32> to vector<8x1xf32>
    %cst_10 = arith.constant 1.140000e+02 : f32
    %37 = vector.broadcast %cst_10 : f32 to vector<8x1xf32>
    %38 = arith.subf %36, %37 : vector<8x1xf32>
    %39 = math.exp %33 : vector<8x128xf32>
    %40 = vector.broadcast %38 : vector<8x1xf32> to vector<8x128xf32>
    %41 = arith.subf %40, %34 : vector<8x128xf32>
    %42 = arith.addf %39, %41 : vector<8x128xf32>
    %cst_11 = arith.constant 1.000000e-30 : f32
    %43 = vector.broadcast %cst_11 : f32 to vector<8x128xf32>
    %44 = arith.maximumf %42, %43 : vector<8x128xf32>
    %45 = math.log %44 : vector<8x128xf32>
    %46 = arith.subf %33, %45 : vector<8x128xf32>
    %c0_12 = arith.constant 0 : index
    %c0_13 = arith.constant 0 : index
    %47 = vector.load %arg3[%c0_12, %c0_13] : memref<8x128xf32, #tpu.memory_space<vmem>>, vector<8x128xf32>
    tpu.vector_store %arg3[%c0_12, %c0_13], %46 {strides = array<i32>} : memref<8x128xf32, #tpu.memory_space<vmem>>, vector<8x128xf32>,
    return
  }
  func.func @transform_0(%arg0: i32) -> (i32, i32) {
    %c0_i32 = arith.constant 0 : i32
    %c0_i32_0 = arith.constant 0 : i32
    return %arg0, %c0_i32 : i32, i32
  }
  func.func @transform_1(%arg0: i32) -> (i32, i32) {
    %c0_i32 = arith.constant 0 : i32
    %c0_i32_0 = arith.constant 0 : i32
    %c0_i32_1 = arith.constant 0 : i32
    return %c0_i32, %c0_i32_0 : i32, i32
  }
  func.func @transform_2(%arg0: i32) -> (i32, i32) {
    %c0_i32 = arith.constant 0 : i32
    %c0_i32_0 = arith.constant 0 : i32
    return %arg0, %c0_i32 : i32, i32
  }
}

module attributes {stable_mosaic.version = 11 : i64} {
  func.func @_arcloss_kernel(%arg0: i32, %arg1: memref<8x2xf32, #tpu.memory_space<vmem>>, %arg2: memref<2x128xf32, #tpu.memory_space<vmem>>, %arg3: memref<8x128xf32, #tpu.memory_space<vmem>>) attributes {dimension_semantics = [#tpu.dimension_semantics<parallel>], iteration_bounds = array<i64: 1>, scalar_prefetch = 0 : i64, scratch_operands = 0 : i64, tpu.core_type = #tpu.core_type<tc>, window_params = [{transform_indices = @transform_0, window_bounds = array<i64: 8, 2>}, {pipeline_mode = #tpu.pipeline_mode<synchronous>, transform_indices = @transform_1, window_bounds = array<i64: 2, 128>}, {transform_indices = @transform_2, window_bounds = array<i64: 8, 128>}]} {
    %c0 = arith.constant 0 : index
    %c0_0 = arith.constant 0 : index
    %0 = vector.load %arg1[%c0, %c0_0] : memref<8x2xf32, #tpu.memory_space<vmem>>, vector<8x2xf32>
    %c0_1 = arith.constant 0 : index
    %c0_2 = arith.constant 0 : index
    %1 = vector.load %arg2[%c0_1, %c0_2] : memref<2x128xf32, #tpu.memory_space<vmem>>, vector<2x128xf32>
    %2 = arith.mulf %0, %0 : vector<8x2xf32>
    %cst = arith.constant dense<0.000000e+00> : vector<8xf32>
    %3 = vector.multi_reduction <add>, %2, %cst [1] : vector<8x2xf32> to vector<8xf32>
    %4 = vector.shape_cast %3 : vector<8xf32> to vector<8x1xf32>
    %cst_3 = arith.constant 1.000000e-24 : f32
    %5 = vector.broadcast %cst_3 : f32 to vector<8x1xf32>
    %6 = arith.maximumf %4, %5 : vector<8x1xf32>
    %7 = math.rsqrt %6 : vector<8x1xf32>
    %8 = vector.broadcast %7 : vector<8x1xf32> to vector<8x2xf32>
    %9 = arith.mulf %0, %8 : vector<8x2xf32>
    %10 = vector.extract_strided_slice %9 {offsets = [0, 0], sizes = [8, 1], strides = [1, 1]} : vector<8x2xf32> to vector<8x1xf32>
    %11 = vector.extract_strided_slice %1 {offsets = [0, 0], sizes = [1, 128], strides = [1, 1]} : vector<2x128xf32> to vector<1x128xf32>
    %12 = vector.broadcast %10 : vector<8x1xf32> to vector<8x128xf32>
    %13 = vector.broadcast %11 : vector<1x128xf32> to vector<8x128xf32>
    %14 = arith.mulf %12, %13 : vector<8x128xf32>
    %15 = vector.extract_strided_slice %9 {offsets = [0, 1], sizes = [8, 1], strides = [1, 1]} : vector<8x2xf32> to vector<8x1xf32>
    %16 = vector.extract_strided_slice %1 {offsets = [1, 0], sizes = [1, 128], strides = [1, 1]} : vector<2x128xf32> to vector<1x128xf32>
    %17 = vector.broadcast %15 : vector<8x1xf32> to vector<8x128xf32>
    %18 = vector.broadcast %16 : vector<1x128xf32> to vector<8x128xf32>
    %19 = arith.mulf %17, %18 : vector<8x128xf32>
    %20 = arith.addf %14, %19 : vector<8x128xf32>
    %cst_4 = arith.constant 1.000000e+01 : f32
    %21 = vector.broadcast %cst_4 : f32 to vector<8x128xf32>
    %22 = arith.mulf %21, %20 : vector<8x128xf32>
    %23 = arith.mulf %20, %20 : vector<8x128xf32>
    %cst_5 = arith.constant 1.000000e+00 : f32
    %24 = vector.broadcast %cst_5 : f32 to vector<8x128xf32>
    %25 = arith.subf %24, %23 : vector<8x128xf32>
    %cst_6 = arith.constant 0.000000e+00 : f32
    %26 = vector.broadcast %cst_6 : f32 to vector<8x128xf32>
    %27 = arith.maximumf %25, %26 : vector<8x128xf32>
    %28 = math.sqrt %27 : vector<8x128xf32>
    %cst_7 = arith.constant 0.540302277 : f32
    %29 = vector.broadcast %cst_7 : f32 to vector<8x128xf32>
    %30 = arith.mulf %22, %29 : vector<8x128xf32>
    %cst_8 = arith.constant 8.414710e+00 : f32
    %31 = vector.broadcast %cst_8 : f32 to vector<8x128xf32>
    %32 = arith.mulf %28, %31 : vector<8x128xf32>
    %33 = arith.subf %30, %32 : vector<8x128xf32>
    %34 = math.exp %22 : vector<8x128xf32>
    %cst_9 = arith.constant dense<0.000000e+00> : vector<8xf32>
    %35 = vector.multi_reduction <add>, %34, %cst_9 [1] : vector<8x128xf32> to vector<8xf32>
    %36 = vector.shape_cast %35 : vector<8xf32> to vector<8x1xf32>
    %cst_10 = arith.constant 1.140000e+02 : f32
    %37 = vector.broadcast %cst_10 : f32 to vector<8x1xf32>
    %38 = arith.subf %36, %37 : vector<8x1xf32>
    %39 = math.exp %33 : vector<8x128xf32>
    %40 = vector.broadcast %38 : vector<8x1xf32> to vector<8x128xf32>
    %41 = arith.subf %40, %34 : vector<8x128xf32>
    %42 = arith.addf %39, %41 : vector<8x128xf32>
    %cst_11 = arith.constant 1.000000e-30 : f32
    %43 = vector.broadcast %cst_11 : f32 to vector<8x128xf32>
    %44 = arith.maximumf %42, %43 : vector<8x128xf32>
    %45 = math.log %44 : vector<8x128xf32>
    %46 = arith.subf %33, %45 : vector<8x128xf32>
    %c0_12 = arith.constant 0 : index
    %c0_13 = arith.constant 0 : index
    %47 = vector.load %arg3[%c0_12, %c0_13] : memref<8x128xf32, #tpu.memory_space<vmem>>, vector<8x128xf32>
    tpu.vector_store %arg3[%c0_12, %c0_13], %46 {strides = array<i32>} : memref<8x128xf32, #tpu.memory_space<vmem>>, vector<8x128xf32>,
    return
  }
  func.func @transform_0(%arg0: i32) -> (i32, i32) {
    %c0_i32 = arith.constant 0 : i32
    %c0_i32_0 = arith.constant 0 : i32
    return %arg0, %c0_i32 : i32, i32
  }
  func.func @transform_1(%arg0: i32) -> (i32, i32) {
    %c0_i32 = arith.constant 0 : i32
    %c0_i32_0 = arith.constant 0 : i32
    %c0_i32_1 = arith.constant 0 : i32
    return %c0_i32, %c0_i32_0 : i32, i32
  }
  func.func @transform_2(%arg0: i32) -> (i32, i32) {
    %c0_i32 = arith.constant 0 : i32
    %c0_i32_0 = arith.constant 0 : i32
    return %arg0, %c0_i32 : i32, i32
  }
}

</mosaic_0001>

<bundles_post_ra>
// kernel: tpu_custom_call.1
= control target key start
LH: loop header
LB: loop body
LE: loop exit
PB: predicated region body
PF: predicated region fallthrough
CT: control target
= control target key end

     0   :  { %vm15_vm0 = vcmask 15360   ;;  %s150_s0 = inlined_call_operand.vmem [shape: f32[8,2], index: 0, kind: input, shape index: {}]   ;;  %s151_s1 = inlined_call_operand.vmem [shape: f32[2,128], index: 1, kind: input, shape index: {}]   ;;  %s152_s2 = inlined_call_operand.hbm [shape: f32[8,128], index: 2, kind: output, shape index: {}]  }
   0x1   :  { %v12_v0 = vld [vmem:[%s150_s0] sm:$0xff] }
   0x2   :  { %7 = vsyncpa [#allocation3], 0  ;;  %v14_v1 = vmul.f32 %v12_v0, %v12_v0  ;;  %v123_v3 = vmov 1   ;;  %v124_v4 = vmov 0   ;;  %v27_v9 = vlaneseq  ;;  %v13_v13 = vld [vmem:[%s151_s1] sm:$0x3] }
   0x3   :  { %89 = vset.pattern.permute.xlu1 %v123_v3  ;;  %88 = vset.pattern.permute.xlu0 %v124_v4  ;;  %s125_s1 = smov [#allocation2]  }
   0x4   :  { %v16_v2 = vsel %vm15_vm0, %v14_v1, 0.0  ;;  %v28_v10 = vshrl.u32 %v27_v9, 7  ;;  %s76_s12 = sshll.u32 %s125_s1, 4  ;;  %s77_s12 = int_to_ptr.vmem [resolvable:$true] %s76_s12 }
   0x5   :  { %17 = vadd.xlane.f32.xlu0 %v16_v2  ;;  %s101_s13 = scalar_lea.vmem %s77_s12, 128  ;;  %p106_p1 = scmp.lt.s32.totalorder %s77_s12, %s77_s12 }
   0x6   :  { %v38_v11 = vsub.s32 1, %v28_v10  ;;  %v29_v12 = vsub.s32 0, %v28_v10  ;;  %p102_p0 = scmp.ne.s32.totalorder %s77_s12, %s101_s13  ;;  %p107_p2 = scmp.lt.s32.totalorder %s101_s13, %s101_s13 }
   0x8   :  { %v39_v14 = vrot.slane %v13_v13, %v38_v11  ;;  %v30_v15 = vrot.slane %v13_v13, %v29_v12  ;;  %p108_p3 = por %p107_p2, %p106_p1 }
   0xa   :  { %p109_p4 = pnand %p108_p3, %p102_p0 }
  0x8e   :  { %v18_v5 = vpop.xlane.xlu0 %17 }
  0x8f   :  { %v19_v6 = vmax.f32 %v18_v5, 1e-24 }
  0x91   :  { %91 = vrsqrt.f32 %v19_v6 }
  0x9e   :  { %v92_v7 = vpop.eup %91 }
  0x9f   :  { %v21_v8 = vmul.f32 %v92_v7, %v12_v0 }
  0xa1   :  { %33 = vperm.xlu1 %89, %v21_v8   ;;  %24 = vperm.xlu0 %88, %v21_v8  }
  0xa5   :  { %90 = vset.pattern.permute.xlu0 %v123_v3 }
 0x11c   :  { %v34_v16 = vpop.permute.xlu1 %33  ;;  %v25_v17 = vpop.permute.xlu0 %24 }
 0x11d   :  { %v40_v18 = vmul.f32 %v39_v14, %v34_v16  ;;  %v31_v19 = vmul.f32 %v30_v15, %v25_v17 }
 0x11f   :  { %v41_v20 = vadd.f32 %v40_v18, %v31_v19 }
 0x121   :  { %v42_v21 = vmul.f32 10.0, %v41_v20  ;;  %v43_v22 = vmul.f32 %v41_v20, %v41_v20 }
 0x123   :  { %v44_v23 = vsub.f32 1.0, %v43_v22  ;;  %v56_v24 = vmul.f32 1.442695, %v42_v21  ;;  %v53_v32 = vmul.f32 0.5403023, %v42_v21 }
 0x125   :  { %v45_v25 = vmax.f32 %v44_v23, 0.0  ;;  %93 = vpow2.f32 %v56_v24 }
 0x127   :  { %95 = vrsqrt.f32 %v45_v25  ;;  %vm48_vm1 = vcmp.eq.f32.partialorder %v45_v25, inf  ;;  %v51_v29 = vand.u32 2147483648, %v45_v25  ;;  %vm50_vm2 = vcmp.eq.f32.partialorder %v45_v25, 0.0 }
 0x132   :  { %v94_v26 = vpop.eup %93 }
 0x133   :  { %58 = vadd.xlane.f32.xlu1 %v94_v26 }
 0x134   :  { %v96_v27 = vpop.eup %95 }
 0x135   :  { %v47_v28 = vmul.f32 %v96_v27, %v45_v25 }
 0x137   :  { %v49_v30 = vsel %vm48_vm1, %v45_v25, %v47_v28 }
 0x138   :  { %v52_v31 = vsel %vm50_vm2, %v51_v29, %v49_v30 }
 0x139   :  { %v54_v33 = vmul.f32 8.41471, %v52_v31 }
 0x13b   :  { %v55_v34 = vsub.f32 %v53_v32, %v54_v33 }
 0x13d   :  { %v61_v35 = vmul.f32 1.442695, %v55_v34 }
 0x13f   :  { %97 = vpow2.f32 %v61_v35 }
 0x14c   :  { %v98_v39 = vpop.eup %97 }
 0x1bc   :  { %v59_v36 = vpop.xlane.xlu1 %58 }
 0x1bd   :  { %v84_v37 = vadd.f32 -114.0, %v59_v36 }
 0x1bf   :  { %v63_v38 = vsub.f32 %v84_v37, %v94_v26 }
 0x1c1   :  { %v64_v40 = vadd.f32 %v98_v39, %v63_v38 }
 0x1c3   :  { %v65_v41 = vmax.f32 %v64_v40, 1e-30 }
 0x1c5   :  { %99 = vlog2.f32 %v65_v41 }
 0x1d2   :  { %v100_v42 = vpop.eup %99 }
 0x1d3   :  { %v67_v43 = vmul.f32 0.6931472, %v100_v42 }
 0x1d5   :  { %v68_v44 = vsub.f32 %v55_v34, %v67_v43 }
 0x1d7   :  { %69 = vst [vmem:[#allocation2] sm:$0xff] %v68_v44 }
 0x1d8   :  { %112 = shalt.err (!%p109_p4)
}
 0x1d9   :  { %79 = dma.vmem_to_hbm [thread:$0]  %s77_s12, 128, %s152_s2, [#allocation3]  }
 0x1da   :  { %121 = dma.done.wait [#allocation3], 128  }
 0x1db   :  { %122 = vsyncadd [#allocation3], 4294967168 }
 0x1dc   :  { %83 = vsyncpa [#allocation3], 1 }

// kernel: tpu_custom_call.1
= control target key start
LH: loop header
LB: loop body
LE: loop exit
PB: predicated region body
PF: predicated region fallthrough
CT: control target
= control target key end

     0   :  { %vm15_vm0 = vcmask 15360   ;;  %s150_s0 = inlined_call_operand.vmem [shape: f32[8,2], index: 0, kind: input, shape index: {}]   ;;  %s151_s1 = inlined_call_operand.vmem [shape: f32[2,128], index: 1, kind: input, shape index: {}]   ;;  %s152_s2 = inlined_call_operand.hbm [shape: f32[8,128], index: 2, kind: output, shape index: {}]  }
   0x1   :  { %v12_v0 = vld [vmem:[%s150_s0] sm:$0xff] }
   0x2   :  { %7 = vsyncpa [#allocation3], 0  ;;  %v14_v1 = vmul.f32 %v12_v0, %v12_v0  ;;  %v123_v3 = vmov 1   ;;  %v124_v4 = vmov 0   ;;  %v27_v9 = vlaneseq  ;;  %v13_v13 = vld [vmem:[%s151_s1] sm:$0x3] }
   0x3   :  { %89 = vset.pattern.permute.xlu1 %v123_v3  ;;  %88 = vset.pattern.permute.xlu0 %v124_v4  ;;  %s125_s1 = smov [#allocation2]  }
   0x4   :  { %v16_v2 = vsel %vm15_vm0, %v14_v1, 0.0  ;;  %v28_v10 = vshrl.u32 %v27_v9, 7  ;;  %s76_s12 = sshll.u32 %s125_s1, 4  ;;  %s77_s12 = int_to_ptr.vmem [resolvable:$true] %s76_s12 }
   0x5   :  { %17 = vadd.xlane.f32.xlu0 %v16_v2  ;;  %s101_s13 = scalar_lea.vmem %s77_s12, 128  ;;  %p106_p1 = scmp.lt.s32.totalorder %s77_s12, %s77_s12 }
   0x6   :  { %v38_v11 = vsub.s32 1, %v28_v10  ;;  %v29_v12 = vsub.s32 0, %v28_v10  ;;  %p102_p0 = scmp.ne.s32.totalorder %s77_s12, %s101_s13  ;;  %p107_p2 = scmp.lt.s32.totalorder %s101_s13, %s101_s13 }
   0x8   :  { %v39_v14 = vrot.slane %v13_v13, %v38_v11  ;;  %v30_v15 = vrot.slane %v13_v13, %v29_v12  ;;  %p108_p3 = por %p107_p2, %p106_p1 }
   0xa   :  { %p109_p4 = pnand %p108_p3, %p102_p0 }
  0x8e   :  { %v18_v5 = vpop.xlane.xlu0 %17 }
  0x8f   :  { %v19_v6 = vmax.f32 %v18_v5, 1e-24 }
  0x91   :  { %91 = vrsqrt.f32 %v19_v6 }
  0x9e   :  { %v92_v7 = vpop.eup %91 }
  0x9f   :  { %v21_v8 = vmul.f32 %v92_v7, %v12_v0 }
  0xa1   :  { %33 = vperm.xlu1 %89, %v21_v8   ;;  %24 = vperm.xlu0 %88, %v21_v8  }
  0xa5   :  { %90 = vset.pattern.permute.xlu0 %v123_v3 }
 0x11c   :  { %v34_v16 = vpop.permute.xlu1 %33  ;;  %v25_v17 = vpop.permute.xlu0 %24 }
 0x11d   :  { %v40_v18 = vmul.f32 %v39_v14, %v34_v16  ;;  %v31_v19 = vmul.f32 %v30_v15, %v25_v17 }
 0x11f   :  { %v41_v20 = vadd.f32 %v40_v18, %v31_v19 }
 0x121   :  { %v42_v21 = vmul.f32 10.0, %v41_v20  ;;  %v43_v22 = vmul.f32 %v41_v20, %v41_v20 }
 0x123   :  { %v44_v23 = vsub.f32 1.0, %v43_v22  ;;  %v56_v24 = vmul.f32 1.442695, %v42_v21  ;;  %v53_v32 = vmul.f32 0.5403023, %v42_v21 }
 0x125   :  { %v45_v25 = vmax.f32 %v44_v23, 0.0  ;;  %93 = vpow2.f32 %v56_v24 }
 0x127   :  { %95 = vrsqrt.f32 %v45_v25  ;;  %vm48_vm1 = vcmp.eq.f32.partialorder %v45_v25, inf  ;;  %v51_v29 = vand.u32 2147483648, %v45_v25  ;;  %vm50_vm2 = vcmp.eq.f32.partialorder %v45_v25, 0.0 }
 0x132   :  { %v94_v26 = vpop.eup %93 }
 0x133   :  { %58 = vadd.xlane.f32.xlu1 %v94_v26 }
 0x134   :  { %v96_v27 = vpop.eup %95 }
 0x135   :  { %v47_v28 = vmul.f32 %v96_v27, %v45_v25 }
 0x137   :  { %v49_v30 = vsel %vm48_vm1, %v45_v25, %v47_v28 }
 0x138   :  { %v52_v31 = vsel %vm50_vm2, %v51_v29, %v49_v30 }
 0x139   :  { %v54_v33 = vmul.f32 8.41471, %v52_v31 }
 0x13b   :  { %v55_v34 = vsub.f32 %v53_v32, %v54_v33 }
 0x13d   :  { %v61_v35 = vmul.f32 1.442695, %v55_v34 }
 0x13f   :  { %97 = vpow2.f32 %v61_v35 }
 0x14c   :  { %v98_v39 = vpop.eup %97 }
 0x1bc   :  { %v59_v36 = vpop.xlane.xlu1 %58 }
 0x1bd   :  { %v84_v37 = vadd.f32 -114.0, %v59_v36 }
 0x1bf   :  { %v63_v38 = vsub.f32 %v84_v37, %v94_v26 }
 0x1c1   :  { %v64_v40 = vadd.f32 %v98_v39, %v63_v38 }
 0x1c3   :  { %v65_v41 = vmax.f32 %v64_v40, 1e-30 }
 0x1c5   :  { %99 = vlog2.f32 %v65_v41 }
 0x1d2   :  { %v100_v42 = vpop.eup %99 }
 0x1d3   :  { %v67_v43 = vmul.f32 0.6931472, %v100_v42 }
 0x1d5   :  { %v68_v44 = vsub.f32 %v55_v34, %v67_v43 }
 0x1d7   :  { %69 = vst [vmem:[#allocation2] sm:$0xff] %v68_v44 }
 0x1d8   :  { %112 = shalt.err (!%p109_p4)
}
 0x1d9   :  { %79 = dma.vmem_to_hbm [thread:$0]  %s77_s12, 128, %s152_s2, [#allocation3]  }
 0x1da   :  { %121 = dma.done.wait [#allocation3], 128  }
 0x1db   :  { %122 = vsyncadd [#allocation3], 4294967168 }
 0x1dc   :  { %83 = vsyncpa [#allocation3], 1 }

</bundles_post_ra>
